<compile_context>
chip_gen: v5e
topology: v5e:2x2
jax: 0.10.0
libtpu: 0.0.40
codegen_flags: <defaults>
</compile_context>

<pallas_src>
import functools

import jax
import jax.numpy as jnp
from jax.experimental import pallas as pl
from jax.experimental.pallas import tpu as pltpu

LANE = 128
SUBLANE = 8


def _round_up(x, m):
    return ((x + m - 1) // m) * m


# ----------------------------- fused Pallas kernel ---------------------------


def _make_fused_mlp_kernel(n_layers, out_valid):
    """Kernel over one batch tile: chained Linear+ReLU then masked log_softmax.

    Ref layout: (x_ref, w0, b0, w1, b1, ..., w{L-1}, b{L-1}, o_ref)
    """

    def kernel(x_ref, *refs):
        o_ref = refs[-1]
        h = x_ref[...]                                    # [TILE_B, D0_pad] f32
        for i in range(n_layers):
            w = refs[2 * i][...]                          # [Din_pad, Dout_pad]
            b = refs[2 * i + 1][...]                      # [1, Dout_pad]
            h = jnp.dot(h, w, preferred_element_type=jnp.float32)  # MXU
            h = jnp.maximum(h + b, 0.0)                   # bias + ReLU on VPU
            # dropout: identity in eval mode

        # log_softmax over dim=1; mask padded lanes to -inf so they don't
        # contribute to the row max / sum.
        lane = jax.lax.broadcasted_iota(jnp.int32, h.shape, 1)
        h = jnp.where(lane < out_valid, h, -jnp.inf)
        m = jnp.max(h, axis=1, keepdims=True)             # XLU
        s = h - m
        lse = jnp.log(jnp.sum(jnp.exp(s), axis=1, keepdims=True))  # EUP + XLU
        o_ref[...] = s - lse

    return kernel


# ------------------------------ JAX wrapper ----------------------------------


@jax.jit
def base_mlp_forward(x, params):
    """x: [B, input_size] (any float dtype); params: tuple of (w [in,out], b [out]).

    Returns log_softmax(MLP(x)) of shape [B, output_size], f32.
    """
    x = x.astype(jnp.float32)
    B, din = x.shape
    n_layers = len(params)

    dims = [din] + [w.shape[1] for (w, _) in params]
    dims_pad = [_round_up(d, LANE) for d in dims]

    # Batch tiling: at least 8 (sublane), at most 256 rows per grid step.
    tile_b = min(_round_up(B, SUBLANE), 256)
    b_pad = _round_up(B, tile_b)

    # Zero-pad input and parameters to lane-dense shapes.
    xp = jnp.zeros((b_pad, dims_pad[0]), jnp.float32).at[:B, :din].set(x)
    padded_params = []
    for i, (w, b) in enumerate(params):
        wp = (jnp.zeros((dims_pad[i], dims_pad[i + 1]), jnp.float32)
              .at[: dims[i], : dims[i + 1]].set(w.astype(jnp.float32)))
        bp = (jnp.zeros((1, dims_pad[i + 1]), jnp.float32)
              .at[:, : dims[i + 1]].set(b.astype(jnp.float32).reshape(1, -1)))
        padded_params.extend([wp, bp])

    grid = (b_pad // tile_b,)

    in_specs = [pl.BlockSpec((tile_b, dims_pad[0]), lambda i: (i, 0))]
    for i in range(n_layers):
        in_specs.append(
            pl.BlockSpec((dims_pad[i], dims_pad[i + 1]), lambda i: (0, 0)))
        in_specs.append(
            pl.BlockSpec((1, dims_pad[i + 1]), lambda i: (0, 0)))
    out_spec = pl.BlockSpec((tile_b, dims_pad[-1]), lambda i: (i, 0))

    flops = 2 * b_pad * sum(
        dims_pad[i] * dims_pad[i + 1] for i in range(n_layers))
    transcendentals = b_pad * (dims_pad[-1] + 1)  # exp per lane + log per row
    bytes_accessed = 4 * (
        b_pad * dims_pad[0]
        + sum(dims_pad[i] * dims_pad[i + 1] + dims_pad[i + 1]
              for i in range(n_layers))
        + b_pad * dims_pad[-1])

    kernel = _make_fused_mlp_kernel(n_layers, dims[-1])

    out_pad = pl.pallas_call(
        kernel,
        out_shape=jax.ShapeDtypeStruct((b_pad, dims_pad[-1]), jnp.float32),
        grid=grid,
        in_specs=in_specs,
        out_specs=out_spec,
        compiler_params=pltpu.CompilerParams(
            dimension_semantics=("parallel",)),
        cost_estimate=pl.CostEstimate(
            flops=flops,
            transcendentals=transcendentals,
            bytes_accessed=bytes_accessed),
    )(xp, *padded_params)

    return out_pad[:B, : dims[-1]]


# ------------------------------ init & reference -----------------------------


def init_base_mlp_params(key, input_size, output_size, hidden_size,
                         n_hidden_layers):
    """Deterministic init mirroring nn.Linear default (U[-1/sqrt(fan_in), +])."""
    layers_size = [input_size] + [hidden_size] * n_hidden_layers + [output_size]
    params = []
    for i in range(len(layers_size) - 1):
        fan_in, fan_out = layers_size[i], layers_size[i + 1]
        key, kw, kb = jax.random.split(key, 3)
        bound = 1.0 / (fan_in ** 0.5)
        # stored as [in, out] (transpose of PyTorch's [out, in])
        w = jax.random.uniform(kw, (fan_in, fan_out), jnp.float32,
                               minval=-bound, maxval=bound)
        b = jax.random.uniform(kb, (fan_out,), jnp.float32,
                               minval=-bound, maxval=bound)
        params.append((w, b))
    return tuple(params)


def reference_forward(x, params):
    """Pure-JAX reference (same math as the PyTorch module in eval mode)."""
    h = x.astype(jnp.float32)
    for w, b in params:
        h = jnp.maximum(h @ w + b, 0.0)
    return jax.nn.log_softmax(h, axis=1)


# ---------------------------------- main -------------------------------------


if __name__ == "__main__":
    key = jax.random.PRNGKey(0)
    kx, kp = jax.random.split(key)

    batch = 8
    input_size = 16
    hidden_size = 32
    output_size = 8
    n_hidden_layers = 2

    x = jax.random.normal(kx, (batch, input_size), jnp.float32)
    params = init_base_mlp_params(kp, input_size, output_size, hidden_size,
                                  n_hidden_layers)

    out = base_mlp_forward(x, params)
    out = jax.block_until_ready(out)

    # sanity: correct shape, rows exp-sum to 1, matches pure-JAX reference
    assert out.shape == (batch, output_size)
    row_sums = jnp.sum(jnp.exp(out), axis=1)
    assert bool(jnp.all(jnp.abs(row_sums - 1.0) < 1e-4))

    ref = reference_forward(x, params)
    assert bool(jnp.all(jnp.abs(out - ref) < 1e-4))

    print("KERNEL_OK")
</pallas_src>

<mosaic_0001>
module attributes {stable_mosaic.version = 11 : i64} {
  func.func @kernel(%arg0: i32, %arg1: memref<8x128xf32, #tpu.memory_space<vmem>>, %arg2: memref<128x128xf32, #tpu.memory_space<vmem>>, %arg3: memref<1x128xf32, #tpu.memory_space<vmem>>, %arg4: memref<128x128xf32, #tpu.memory_space<vmem>>, %arg5: memref<1x128xf32, #tpu.memory_space<vmem>>, %arg6: memref<128x128xf32, #tpu.memory_space<vmem>>, %arg7: memref<1x128xf32, #tpu.memory_space<vmem>>, %arg8: memref<8x128xf32, #tpu.memory_space<vmem>>) attributes {dimension_semantics = [#tpu.dimension_semantics<parallel>], iteration_bounds = array<i64: 1>, scalar_prefetch = 0 : i64, scratch_operands = 0 : i64, tpu.core_type = #tpu.core_type<tc>, window_params = [{transform_indices = @transform_0, window_bounds = array<i64: 8, 128>}, {pipeline_mode = #tpu.pipeline_mode<synchronous>, transform_indices = @transform_1, window_bounds = array<i64: 128, 128>}, {pipeline_mode = #tpu.pipeline_mode<synchronous>, transform_indices = @transform_2, window_bounds = array<i64: 1, 128>}, {pipeline_mode = #tpu.pipeline_mode<synchronous>, transform_indices = @transform_3, window_bounds = array<i64: 128, 128>}, {pipeline_mode = #tpu.pipeline_mode<synchronous>, transform_indices = @transform_4, window_bounds = array<i64: 1, 128>}, {pipeline_mode = #tpu.pipeline_mode<synchronous>, transform_indices = @transform_5, window_bounds = array<i64: 128, 128>}, {pipeline_mode = #tpu.pipeline_mode<synchronous>, transform_indices = @transform_6, window_bounds = array<i64: 1, 128>}, {transform_indices = @transform_7, window_bounds = array<i64: 8, 128>}]} {
    %c0 = arith.constant 0 : index
    %c0_0 = arith.constant 0 : index
    %0 = vector.load %arg1[%c0, %c0_0] : memref<8x128xf32, #tpu.memory_space<vmem>>, vector<8x128xf32>
    %c0_1 = arith.constant 0 : index
    %c0_2 = arith.constant 0 : index
    %1 = vector.load %arg2[%c0_1, %c0_2] : memref<128x128xf32, #tpu.memory_space<vmem>>, vector<128x128xf32>
    %c0_3 = arith.constant 0 : index
    %c0_4 = arith.constant 0 : index
    %2 = vector.load %arg3[%c0_3, %c0_4] : memref<1x128xf32, #tpu.memory_space<vmem>>, vector<1x128xf32>
    %cst = arith.constant dense<0.000000e+00> : vector<8x128xf32>
    %3 = tpu.matmul %0, %1, %cst {dimension_numbers = #tpu.dot_dimension_numbers<[1], [0], [0], [1], [0, 0, 1, 1], [], []>} : vector<8x128xf32>, vector<128x128xf32>, vector<8x128xf32> -> vector<8x128xf32>
    %4 = vector.broadcast %2 : vector<1x128xf32> to vector<8x128xf32>
    %5 = arith.addf %3, %4 : vector<8x128xf32>
    %cst_5 = arith.constant 0.000000e+00 : f32
    %6 = vector.broadcast %cst_5 : f32 to vector<8x128xf32>
    %7 = arith.maximumf %5, %6 : vector<8x128xf32>
    %c0_6 = arith.constant 0 : index
    %c0_7 = arith.constant 0 : index
    %8 = vector.load %arg4[%c0_6, %c0_7] : memref<128x128xf32, #tpu.memory_space<vmem>>, vector<128x128xf32>
    %c0_8 = arith.constant 0 : index
    %c0_9 = arith.constant 0 : index
    %9 = vector.load %arg5[%c0_8, %c0_9] : memref<1x128xf32, #tpu.memory_space<vmem>>, vector<1x128xf32>
    %cst_10 = arith.constant dense<0.000000e+00> : vector<8x128xf32>
    %10 = tpu.matmul %7, %8, %cst_10 {dimension_numbers = #tpu.dot_dimension_numbers<[1], [0], [0], [1], [0, 0, 1, 1], [], []>} : vector<8x128xf32>, vector<128x128xf32>, vector<8x128xf32> -> vector<8x128xf32>
    %11 = vector.broadcast %9 : vector<1x128xf32> to vector<8x128xf32>
    %12 = arith.addf %10, %11 : vector<8x128xf32>
    %cst_11 = arith.constant 0.000000e+00 : f32
    %13 = vector.broadcast %cst_11 : f32 to vector<8x128xf32>
    %14 = arith.maximumf %12, %13 : vector<8x128xf32>
    %c0_12 = arith.constant 0 : index
    %c0_13 = arith.constant 0 : index
    %15 = vector.load %arg6[%c0_12, %c0_13] : memref<128x128xf32, #tpu.memory_space<vmem>>, vector<128x128xf32>
    %c0_14 = arith.constant 0 : index
    %c0_15 = arith.constant 0 : index
    %16 = vector.load %arg7[%c0_14, %c0_15] : memref<1x128xf32, #tpu.memory_space<vmem>>, vector<1x128xf32>
    %cst_16 = arith.constant dense<0.000000e+00> : vector<8x128xf32>
    %17 = tpu.matmul %14, %15, %cst_16 {dimension_numbers = #tpu.dot_dimension_numbers<[1], [0], [0], [1], [0, 0, 1, 1], [], []>} : vector<8x128xf32>, vector<128x128xf32>, vector<8x128xf32> -> vector<8x128xf32>
    %18 = vector.broadcast %16 : vector<1x128xf32> to vector<8x128xf32>
    %19 = arith.addf %17, %18 : vector<8x128xf32>
    %cst_17 = arith.constant 0.000000e+00 : f32
    %20 = vector.broadcast %cst_17 : f32 to vector<8x128xf32>
    %21 = arith.maximumf %19, %20 : vector<8x128xf32>
    %22 = tpu.iota {dimensions = array<i32: 1>} : vector<8x128xi32>
    %c8_i32 = arith.constant 8 : i32
    %23 = vector.broadcast %c8_i32 : i32 to vector<8x128xi32>
    %24 = arith.cmpi slt, %22, %23 : vector<8x128xi32>
    %cst_18 = arith.constant 0xFF800000 : f32
    %25 = vector.broadcast %cst_18 : f32 to vector<8x128xf32>
    %26 = arith.select %24, %21, %25 : vector<8x128xi1>, vector<8x128xf32>
    %cst_19 = arith.constant dense<0xFF800000> : vector<8xf32>
    %27 = vector.multi_reduction <maximumf>, %26, %cst_19 [1] : vector<8x128xf32> to vector<8xf32>
    %28 = vector.shape_cast %27 : vector<8xf32> to vector<8x1xf32>
    %29 = vector.broadcast %28 : vector<8x1xf32> to vector<8x128xf32>
    %30 = arith.subf %26, %29 : vector<8x128xf32>
    %31 = math.exp %30 : vector<8x128xf32>
    %cst_20 = arith.constant dense<0.000000e+00> : vector<8xf32>
    %32 = vector.multi_reduction <add>, %31, %cst_20 [1] : vector<8x128xf32> to vector<8xf32>
    %33 = vector.shape_cast %32 : vector<8xf32> to vector<8x1xf32>
    %34 = math.log %33 : vector<8x1xf32>
    %35 = vector.broadcast %34 : vector<8x1xf32> to vector<8x128xf32>
    %36 = arith.subf %30, %35 : vector<8x128xf32>
    %c0_21 = arith.constant 0 : index
    %c0_22 = arith.constant 0 : index
    %37 = vector.load %arg8[%c0_21, %c0_22] : memref<8x128xf32, #tpu.memory_space<vmem>>, vector<8x128xf32>
    tpu.vector_store %arg8[%c0_21, %c0_22], %36 {strides = array<i32>} : memref<8x128xf32, #tpu.memory_space<vmem>>, vector<8x128xf32>,
    return
  }
  func.func @transform_0(%arg0: i32) -> (i32, i32) {
    %c0_i32 = arith.constant 0 : i32
    %c0_i32_0 = arith.constant 0 : i32
    return %arg0, %c0_i32 : i32, i32
  }
  func.func @transform_1(%arg0: i32) -> (i32, i32) {
    %c0_i32 = arith.constant 0 : i32
    %c0_i32_0 = arith.constant 0 : i32
    %c0_i32_1 = arith.constant 0 : i32
    return %c0_i32, %c0_i32_0 : i32, i32
  }
  func.func @transform_2(%arg0: i32) -> (i32, i32) {
    %c0_i32 = arith.constant 0 : i32
    %c0_i32_0 = arith.constant 0 : i32
    %c0_i32_1 = arith.constant 0 : i32
    return %c0_i32, %c0_i32_0 : i32, i32
  }
  func.func @transform_3(%arg0: i32) -> (i32, i32) {
    %c0_i32 = arith.constant 0 : i32
    %c0_i32_0 = arith.constant 0 : i32
    %c0_i32_1 = arith.constant 0 : i32
    return %c0_i32, %c0_i32_0 : i32, i32
  }
  func.func @transform_4(%arg0: i32) -> (i32, i32) {
    %c0_i32 = arith.constant 0 : i32
    %c0_i32_0 = arith.constant 0 : i32
    %c0_i32_1 = arith.constant 0 : i32
    return %c0_i32, %c0_i32_0 : i32, i32
  }
  func.func @transform_5(%arg0: i32) -> (i32, i32) {
    %c0_i32 = arith.constant 0 : i32
    %c0_i32_0 = arith.constant 0 : i32
    %c0_i32_1 = arith.constant 0 : i32
    return %c0_i32, %c0_i32_0 : i32, i32
  }
  func.func @transform_6(%arg0: i32) -> (i32, i32) {
    %c0_i32 = arith.constant 0 : i32
    %c0_i32_0 = arith.constant 0 : i32
    %c0_i32_1 = arith.constant 0 : i32
    return %c0_i32, %c0_i32_0 : i32, i32
  }
  func.func @transform_7(%arg0: i32) -> (i32, i32) {
    %c0_i32 = arith.constant 0 : i32
    %c0_i32_0 = arith.constant 0 : i32
    return %arg0, %c0_i32 : i32, i32
  }
}

</mosaic_0001>

<bundles_post_ra>
// kernel: base_mlp_forward.1
= control target key start
LH: loop header
LB: loop body
LE: loop exit
PB: predicated region body
PF: predicated region fallthrough
CT: control target
= control target key end

     0   :  { %s416_s0 = inlined_call_operand.vmem [shape: f32[8,128], index: 0, kind: input, shape index: {}]   ;;  %s417_s1 = inlined_call_operand.vmem [shape: f32[128,128], index: 1, kind: input, shape index: {}]   ;;  %s418_s2 = inlined_call_operand.vmem [shape: f32[1,128], index: 2, kind: input, shape index: {}]   ;;  %s419_s3 = inlined_call_operand.vmem [shape: f32[128,128], index: 3, kind: input, shape index: {}]   ;;  %s420_s4 = inlined_call_operand.vmem [shape: f32[1,128], index: 4, kind: input, shape index: {}]   ;;  %s421_s5 = inlined_call_operand.vmem [shape: f32[128,128], index: 5, kind: input, shape index: {}]   ;;  %s422_s6 = inlined_call_operand.vmem [shape: f32[1,128], index: 6, kind: input, shape index: {}]   ;;  %s423_s7 = inlined_call_operand.hbm [shape: f32[8,128], index: 7, kind: output, shape index: {}]  }
   0x1   :  { %v43_v0 = vld [vmem:[%s417_s1 + $0x78] sm:$0xff]  ;;  %v42_v1 = vld [vmem:[%s417_s1 + $0x70] sm:$0xff]  ;;  %v41_v2 = vld [vmem:[%s417_s1 + $0x68] sm:$0xff] }
   0x2   :  { %48 = vmatpush.msra.mxu0 %v43_v0  ;;  %v40_v3 = vld [vmem:[%s417_s1 + $0x60] sm:$0xff]  ;;  %v84_v4 = vld [vmem:[%s419_s3 + $0x78] sm:$0xff]  ;;  %v83_v6 = vld [vmem:[%s419_s3 + $0x70] sm:$0xff] }
   0x3   :  { %v39_v5 = vld [vmem:[%s417_s1 + $0x58] sm:$0xff]  ;;  %89 = vmatpush.msra.mxu1 %v84_v4  ;;  %v82_v7 = vld [vmem:[%s419_s3 + $0x68] sm:$0xff]  ;;  %v38_v8 = vld [vmem:[%s417_s1 + $0x50] sm:$0xff] }
   0x4   :  { %49 = vmatpush.msra.mxu0 %v42_v1  ;;  %v81_v9 = vld [vmem:[%s419_s3 + $0x60] sm:$0xff]  ;;  %v37_v10 = vld [vmem:[%s417_s1 + $0x48] sm:$0xff]  ;;  %v80_v11 = vld [vmem:[%s419_s3 + $0x58] sm:$0xff] }
   0x5   :  { %90 = vmatpush.msra.mxu1 %v83_v6 }
   0x6   :  { %50 = vmatpush.msra.mxu0 %v41_v2 }
   0x7   :  { %91 = vmatpush.msra.mxu1 %v82_v7 }
   0x8   :  { %51 = vmatpush.msra.mxu0 %v40_v3 }
   0xa   :  { %52 = vmatpush.msra.mxu0 %v39_v5 }
   0xc   :  { %53 = vmatpush.msra.mxu0 %v38_v8 }
   0xd   :  { %12 = vsyncpa [#allocation3], 0  ;;  %v36_v12 = vld [vmem:[%s417_s1 + $0x40] sm:$0xff]  ;;  %92 = vmatpush.msra.mxu1 %v81_v9  ;;  %v79_v13 = vld [vmem:[%s419_s3 + $0x50] sm:$0xff]  ;;  %v151_v57 = vlaneseq  ;;  %s173_s30 = sshll.u32 %s423_s7, 4  ;;  %s174_s30 = int_to_ptr.hbm [resolvable:$true] %s173_s30 }
   0xe   :  { %54 = vmatpush.msra.mxu0 %v37_v10  ;;  %v35_v14 = vld [vmem:[%s417_s1 + $0x38] sm:$0xff]  ;;  %v78_v15 = vld [vmem:[%s419_s3 + $0x48] sm:$0xff]  ;;  %v34_v16 = vld [vmem:[%s417_s1 + $0x30] sm:$0xff] }
   0xf   :  { %93 = vmatpush.msra.mxu1 %v80_v11  ;;  %v77_v17 = vld [vmem:[%s419_s3 + $0x40] sm:$0xff]  ;;  %v33_v18 = vld [vmem:[%s417_s1 + $0x28] sm:$0xff]  ;;  %v76_v19 = vld [vmem:[%s419_s3 + $0x38] sm:$0xff]  ;;  %v152_v59 = vand.u32 127, %v151_v57 }
  0x10   :  { %55 = vmatpush.msra.mxu0 %v36_v12  ;;  %v32_v20 = vld [vmem:[%s417_s1 + $0x20] sm:$0xff]  ;;  %v75_v21 = vld [vmem:[%s419_s3 + $0x30] sm:$0xff]  ;;  %v31_v22 = vld [vmem:[%s417_s1 + $0x18] sm:$0xff] }
  0x11   :  { %94 = vmatpush.msra.mxu1 %v79_v13  ;;  %v74_v23 = vld [vmem:[%s419_s3 + $0x28] sm:$0xff]  ;;  %v30_v24 = vld [vmem:[%s417_s1 + $0x10] sm:$0xff]  ;;  %v73_v25 = vld [vmem:[%s419_s3 + $0x20] sm:$0xff]  ;;  %vm153_vm0 = vcmp.lt.s32.totalorder %v152_v59, 8 }
  0x12   :  { %56 = vmatpush.msra.mxu0 %v35_v14  ;;  %v29_v26 = vld [vmem:[%s417_s1 + $0x8] sm:$0xff]  ;;  %v72_v27 = vld [vmem:[%s419_s3 + $0x18] sm:$0xff]  ;;  %v28_v28 = vld [vmem:[%s417_s1] sm:$0xff] }
  0x13   :  { %95 = vmatpush.msra.mxu1 %v78_v15  ;;  %v27_v29 = vld [vmem:[%s416_s0] sm:$0xff]  ;;  %v71_v30 = vld [vmem:[%s419_s3 + $0x10] sm:$0xff]  ;;  %v70_v31 = vld [vmem:[%s419_s3 + $0x8] sm:$0xff] }
  0x14   :  { %57 = vmatpush.msra.mxu0 %v34_v16  ;;  %v69_v32 = vld [vmem:[%s419_s3] sm:$0xff]  ;;  %v125_v33 = vld [vmem:[%s421_s5 + $0x78] sm:$0xff]  ;;  %v124_v34 = vld [vmem:[%s421_s5 + $0x70] sm:$0xff] }
  0x15   :  { %96 = vmatpush.msra.mxu1 %v77_v17  ;;  %130 = vmatpush.msra.mxu2 %v125_v33  ;;  %v123_v35 = vld [vmem:[%s421_s5 + $0x68] sm:$0xff]  ;;  %v122_v36 = vld [vmem:[%s421_s5 + $0x60] sm:$0xff]  ;;  %v121_v37 = vld [vmem:[%s421_s5 + $0x58] sm:$0xff] }
  0x16   :  { %58 = vmatpush.msra.mxu0 %v33_v18  ;;  %v120_v38 = vld [vmem:[%s421_s5 + $0x50] sm:$0xff]  ;;  %v119_v39 = vld [vmem:[%s421_s5 + $0x48] sm:$0xff]  ;;  %v118_v40 = vld [vmem:[%s421_s5 + $0x40] sm:$0xff] }
  0x17   :  { %97 = vmatpush.msra.mxu1 %v76_v19  ;;  %131 = vmatpush.msra.mxu2 %v124_v34  ;;  %v117_v41 = vld [vmem:[%s421_s5 + $0x38] sm:$0xff]  ;;  %v116_v42 = vld [vmem:[%s421_s5 + $0x30] sm:$0xff]  ;;  %v115_v43 = vld [vmem:[%s421_s5 + $0x28] sm:$0xff] }
  0x18   :  { %59 = vmatpush.msra.mxu0 %v32_v20  ;;  %v114_v44 = vld [vmem:[%s421_s5 + $0x20] sm:$0xff]  ;;  %v113_v45 = vld [vmem:[%s421_s5 + $0x18] sm:$0xff]  ;;  %v112_v50 = vld [vmem:[%s421_s5 + $0x10] sm:$0xff] }
  0x19   :  { %98 = vmatpush.msra.mxu1 %v75_v21  ;;  %132 = vmatpush.msra.mxu2 %v123_v35  ;;  %v183_v46 = vld [vmem:[%s418_s2] ss:$0 sm:$0xff]  ;;  %v111_v51 = vld [vmem:[%s421_s5 + $0x8] sm:$0xff] }
  0x1a   :  { %60 = vmatpush.msra.mxu0 %v31_v22  ;;  %v110_v52 = vld [vmem:[%s421_s5] sm:$0xff] }
  0x1b   :  { %99 = vmatpush.msra.mxu1 %v74_v23  ;;  %133 = vmatpush.msra.mxu2 %v122_v36  ;;  %v184_v53 = vld [vmem:[%s420_s4] ss:$0 sm:$0xff]  ;;  %s216_s4 = smov [#allocation2]  }
  0x1c   :  { %61 = vmatpush.msra.mxu0 %v30_v24  ;;  %v185_v58 = vld [vmem:[%s422_s6] ss:$0 sm:$0xff]  ;;  %s171_s5 = sshll.u32 %s216_s4, 4  ;;  %s172_s5 = int_to_ptr.vmem [resolvable:$true] %s171_s5 }
  0x1d   :  { %100 = vmatpush.msra.mxu1 %v73_v25  ;;  %134 = vmatpush.msra.mxu2 %v121_v37 }
  0x1e   :  { %62 = vmatpush.msra.mxu0 %v29_v26 }
  0x1f   :  { %101 = vmatpush.msra.mxu1 %v72_v27  ;;  %135 = vmatpush.msra.mxu2 %v120_v38 }
  0x20   :  { %63 = vmatpush.msra.mxu0 %v28_v28 }
  0x21   :  { %64 = vmatmul.f32.vlgmr.msra.gmra.mxu0 %v27_v29  ;;  %102 = vmatpush.msra.mxu1 %v71_v30 }
  0x22   :  { %136 = vmatpush.msra.mxu2 %v119_v39 }
  0x23   :  { %103 = vmatpush.msra.mxu1 %v70_v31 }
  0x24   :  { %137 = vmatpush.msra.mxu2 %v118_v40 }
  0x25   :  { %104 = vmatpush.msra.mxu1 %v69_v32 }
  0x26   :  { %138 = vmatpush.msra.mxu2 %v117_v41 }
  0x28   :  { %139 = vmatpush.msra.mxu2 %v116_v42 }
  0x2a   :  { %140 = vmatpush.msra.mxu2 %v115_v43 }
  0x2c   :  { %141 = vmatpush.msra.mxu2 %v114_v44 }
  0x2e   :  { %142 = vmatpush.msra.mxu2 %v113_v45 }
  0x30   :  { %143 = vmatpush.msra.mxu2 %v112_v50 }
  0x32   :  { %144 = vmatpush.msra.mxu2 %v111_v51 }
  0x34   :  { %145 = vmatpush.msra.mxu2 %v110_v52 }
  0x9e   :  { %v65_v47 = vpop.f32.mrf.mxu0 }
  0x9f   :  { %v66_v48 = vadd.f32 %v183_v46, %v65_v47 }
  0xa1   :  { %v68_v49 = vmax.f32 %v66_v48, 0.0 }
  0xa3   :  { %105 = vmatmul.f32.vlgmr.msra.gmra.mxu1 %v68_v49 }
 0x120   :  { %v106_v54 = vpop.f32.mrf.mxu1 }
 0x121   :  { %v107_v55 = vadd.f32 %v184_v53, %v106_v54 }
 0x123   :  { %v109_v56 = vmax.f32 %v107_v55, 0.0 }
 0x125   :  { %146 = vmatmul.f32.vlgmr.msra.gmra.mxu2 %v109_v56 }
 0x1a8   :  { %v147_v60 = vpop.f32.mrf.mxu2 }
 0x1a9   :  { %v148_v61 = vadd.f32 %v185_v58, %v147_v60 }
 0x1ab   :  { %v150_v62 = vmax.f32 %v148_v61, 0.0 }
 0x1ad   :  { %v154_v63 = vsel %vm153_vm0, %v150_v62, -inf }
 0x1ae   :  { %155 = vmax.xlane.f32.xlu0 %v154_v63 }
 0x221   :  { %v156_v0 = vpop.xlane.xlu0 %155 }
 0x222   :  { %v157_v1 = vsub.f32 %v154_v63, %v156_v0 }
 0x224   :  { %v158_v2 = vmul.f32 1.442695, %v157_v1 }
 0x226   :  { %186 = vpow2.f32 %v158_v2 }
 0x22c   :  { %v187_v3 = vpop.eup %186 }
 0x22d   :  { %160 = vadd.xlane.f32.xlu0 %v187_v3 }
 0x2a0   :  { %v161_v4 = vpop.xlane.xlu0 %160 }
 0x2a1   :  { %188 = vlog2.f32 %v161_v4 }
 0x2a7   :  { %v189_v5 = vpop.eup %188 }
 0x2a8   :  { %v163_v6 = vmul.f32 0.6931472, %v189_v5 }
 0x2aa   :  { %v164_v7 = vsub.f32 %v157_v1, %v163_v6 }
 0x2ac   :  { %165 = vst [vmem:[#allocation2] sm:$0xff] %v164_v7 }
 0x2ad   :  { %176 = dma.vmem_to_hbm [thread:$0]  %s172_s5, 128, %s174_s30, [#allocation3]  }
 0x2ae   :  { %214 = dma.done.wait [#allocation3], 128  }
 0x2af   :  { %215 = vsyncadd [#allocation3], 4294967168 }
 0x2b0   :  { %181 = vsyncpa [#allocation3], 1 }

</bundles_post_ra>
